<compile_context>
chip_gen: v5e
topology: v5e:2x2
jax: 0.10.0
libtpu: 0.0.40
codegen_flags: <defaults>
</compile_context>

<pallas_src>
import functools

import jax
import jax.numpy as jnp
import numpy as np
from jax.experimental import pallas as pl
from jax.experimental.pallas import tpu as pltpu


# ---------------------------------------------------------------------------
# Kernel: fused sub-pixel transposed conv + BatchNorm(train) + ReLU.
#   x_ref : (N, Ci_p, H*W)        NCHW input, Ci zero-padded to multiple of 8
#   w_ref : (4*Co, 4*Ci_p)        packed weights: row=(2r+c)*Co+co, col=tap*Ci_p+ci
#   m_ref : (4, N*HW)             per-tap boundary masks (host-built)
#   g_ref : (Co, 1)  b_ref:(Co,1) BN gamma / beta
#   o_ref : (4*Co, N*HW)          phase-major pre-shuffle output (dense stores)
# ---------------------------------------------------------------------------
def _deconv_bn_relu_kernel(x_ref, w_ref, m_ref, g_ref, b_ref, o_ref, *,
                           shifts, eps, relu, mxu_dtype):
    n, _, hw = x_ref.shape
    co = g_ref.shape[0]
    lanes = n * hw

    # Merge the batch onto the lane axis (lane concat at HW-aligned offsets).
    xcat = jnp.concatenate([x_ref[b].astype(jnp.float32) for b in range(n)],
                           axis=-1)                                # (Ci_p, N*HW)

    # Stacked patches for the 2x2 tap neighbourhood: XLU lane rolls + masks
    # (zero-fill at image row/col boundaries; wrap across batch seams is
    # always masked, so circular rotation is safe).
    patches = []
    for t in range(4):
        rolled = xcat if shifts[t] == 0 else pltpu.roll(xcat, shifts[t], 1)
        patches.append(rolled * m_ref[t:t + 1, :])                 # (Ci_p, N*HW)
    p = jnp.concatenate(patches, axis=0)                           # (4*Ci_p, N*HW)

    # One contraction for all taps, phases, channels and the whole batch.
    y = jnp.dot(w_ref[...].astype(mxu_dtype), p.astype(mxu_dtype),
                preferred_element_type=jnp.float32)                # (4*Co, N*HW)

    # BatchNorm (training-mode batch statistics), centered variance.
    inv_cnt = 1.0 / float(4 * lanes)                               # 1/(N*Ho*Wo)
    rs = jnp.sum(y, axis=1, keepdims=True)                         # (4*Co, 1)
    ch_sum = rs[0:co] + rs[co:2 * co] + rs[2 * co:3 * co] + rs[3 * co:4 * co]
    mean = ch_sum * inv_cnt                                        # (Co, 1)
    mean4 = jnp.concatenate([mean] * 4, axis=0)                    # (4*Co, 1)
    d = y - mean4
    rss = jnp.sum(d * d, axis=1, keepdims=True)                    # (4*Co, 1)
    ch_ss = rss[0:co] + rss[co:2 * co] + rss[2 * co:3 * co] + rss[3 * co:4 * co]
    var = jnp.maximum(ch_ss * inv_cnt, 0.0)                        # biased var
    scale = g_ref[...] * jax.lax.rsqrt(var + eps)                  # EUP rsqrt
    shift = b_ref[...] - mean * scale
    scale4 = jnp.concatenate([scale] * 4, axis=0)
    shift4 = jnp.concatenate([shift] * 4, axis=0)

    # Normalize + ReLU + single dense 512-lane store.
    # TODO(synk): running-stat (momentum) updates are not produced (forward-
    # parity only, matching the PyTorch training-mode forward).
    z = y * scale4 + shift4
    if relu:
        z = jnp.maximum(z, 0.0)
    o_ref[...] = z.astype(o_ref.dtype)


# ---------------------------------------------------------------------------
# Host-side packing helpers.
# ---------------------------------------------------------------------------
def _pack_deconv_weight(weight, padding, ci_pad):
    """PyTorch ConvTranspose2d weight (Ci,Co,K,K) -> (4*Co, 4*Ci_pad)."""
    ci, co, k, _ = weight.shape
    w_np = np.asarray(weight, dtype=np.float32)
    packed = np.zeros((4 * co, 4 * ci_pad), np.float32)
    for dh in (0, 1):
        for dw in (0, 1):
            t = 2 * dh + dw
            for r in (0, 1):
                for c in (0, 1):
                    ph = 2 * r + c
                    kh = r - padding + 2 - 2 * dh
                    kw = c - padding + 2 - 2 * dw
                    if 0 <= kh < k and 0 <= kw < k:
                        packed[ph * co:(ph + 1) * co,
                               t * ci_pad:t * ci_pad + ci] = w_np[:, :, kh, kw].T
    return jnp.asarray(packed)


def _build_tap_masks(n, h, w, padding):
    """Per-tap boundary masks (1 where the shifted source stays in-image)."""
    hw = h * w
    hh = np.arange(hw) // w
    jj = np.arange(hw) % w
    rows = []
    for dh in (0, 1):
        for dw in (0, 1):
            roff = padding - 1 + dh
            coff = padding - 1 + dw
            ok = ((hh + roff >= 0) & (hh + roff < h)
                  & (jj + coff >= 0) & (jj + coff < w))
            rows.append(ok.astype(np.float32))
    m = np.stack(rows, axis=0)                  # (4, HW)
    return jnp.asarray(np.tile(m, (1, n)))      # (4, N*HW)


# ---------------------------------------------------------------------------
# Wrapper: free NCHW metadata reshape in, single fused pallas_call, tiny
# phase->space pixel-shuffle out.
# ---------------------------------------------------------------------------
def deconv2d_forward(x_nchw, weight, gamma, beta, *, stride=2, padding=0,
                     output_padding=None, relu=True, eps=1e-5,
                     mxu_dtype=jnp.float32):
    n, ci, h, w = x_nchw.shape
    ci_w, co, k, k2 = weight.shape
    assert ci_w == ci and k == k2
    if stride != 2 or k != 3:
        # TODO(synk): stride=1 / other kernel sizes of Deconv2d are not ported.
        raise NotImplementedError("only kernel_size=3, stride=2 is implemented")
    if output_padding is None:
        output_padding = 1 if padding == 1 else 0
    assert (padding, output_padding) in ((0, 0), (1, 1))

    hw = h * w
    lanes = n * hw
    ci_pad = -(-ci // 8) * 8          # keep tap blocks sublane-tile aligned

    x2 = x_nchw.reshape(n, ci, hw)                               # free reshape
    if ci_pad != ci:
        x2 = jnp.pad(x2, ((0, 0), (0, ci_pad - ci), (0, 0)))     # zero Ci rows
    w_packed = _pack_deconv_weight(weight, padding, ci_pad)      # (4Co, 4Ci_p)
    masks = _build_tap_masks(n, h, w, padding)                   # (4, N*HW)
    g2 = gamma.reshape(co, 1).astype(jnp.float32)
    b2 = beta.reshape(co, 1).astype(jnp.float32)

    # patch_t[v] = x[v + roff*W + coff]  ==  np.roll(x, -(roff*W+coff))[v]
    shifts = tuple(
        int((-((padding - 1 + dh) * w + (padding - 1 + dw))) % lanes)
        for dh in (0, 1) for dw in (0, 1))

    yp = pl.pallas_call(
        functools.partial(_deconv_bn_relu_kernel, shifts=shifts, eps=eps,
                          relu=relu, mxu_dtype=mxu_dtype),
        out_shape=jax.ShapeDtypeStruct((4 * co, lanes), jnp.float32),
        grid=(1,),
        in_specs=[
            pl.BlockSpec((n, ci_pad, hw), lambda i: (0, 0, 0)),
            pl.BlockSpec((4 * co, 4 * ci_pad), lambda i: (0, 0)),
            pl.BlockSpec((4, lanes), lambda i: (0, 0)),
            pl.BlockSpec((co, 1), lambda i: (0, 0)),
            pl.BlockSpec((co, 1), lambda i: (0, 0)),
        ],
        out_specs=pl.BlockSpec((4 * co, lanes), lambda i: (0, 0)),
        compiler_params=pltpu.CompilerParams(
            dimension_semantics=("arbitrary",)),
    )(x2, w_packed, masks, g2, b2)

    # phase (r, c) -> interleaved NCHW output (depth-to-space, 256 KB here).
    out = yp.reshape(2, 2, co, n, h, w)
    out = jnp.transpose(out, (3, 2, 4, 0, 5, 1))                 # (n,co,h,2,w,2)
    return out.reshape(n, co, 2 * h, 2 * w)


# ---------------------------------------------------------------------------
# Pure-JAX reference (correctness check only).
# ---------------------------------------------------------------------------
def _reference_forward(x, weight, gamma, beta, *, stride, padding,
                       output_padding, relu=True, eps=1e-5):
    k = weight.shape[2]
    w_conv = jnp.transpose(weight[:, :, ::-1, ::-1], (1, 0, 2, 3))   # (Co,Ci,K,K)
    pad_lo = k - 1 - padding
    pad_hi = k - 1 - padding + output_padding
    y = jax.lax.conv_general_dilated(
        x, w_conv, window_strides=(1, 1),
        padding=[(pad_lo, pad_hi), (pad_lo, pad_hi)],
        lhs_dilation=(stride, stride),
        dimension_numbers=("NCHW", "OIHW", "NCHW"))
    if stride == 2:
        h, w = x.shape[2], x.shape[3]
        y = y[:, :, :2 * h, :2 * w]
    mean = jnp.mean(y, axis=(0, 2, 3), keepdims=True)
    var = jnp.mean(jnp.square(y - mean), axis=(0, 2, 3), keepdims=True)
    out = ((y - mean) * jax.lax.rsqrt(var + eps)
           * gamma.reshape(1, -1, 1, 1) + beta.reshape(1, -1, 1, 1))
    if relu:
        out = jnp.maximum(out, 0.0)
    return out


if __name__ == "__main__":
    # Deconv2d(in=4, out=8, kernel_size=3, stride=2, bn=True, relu=True)
    N, CIN, COUT, H, W, K = 2, 4, 8, 16, 16, 3

    key = jax.random.PRNGKey(0)
    kx, kw = jax.random.split(key)

    x = jax.random.normal(kx, (N, CIN, H, W), dtype=jnp.float32)

    # Deterministic xavier-uniform init of the ConvTranspose2d weight (Ci,Co,K,K).
    fan_in, fan_out = COUT * K * K, CIN * K * K
    bound = float(np.sqrt(6.0 / (fan_in + fan_out)))
    weight = jax.random.uniform(kw, (CIN, COUT, K, K), dtype=jnp.float32,
                                minval=-bound, maxval=bound)

    # BatchNorm2d after init_bn: weight=1, bias=0.
    gamma = jnp.ones((COUT,), jnp.float32)
    beta = jnp.zeros((COUT,), jnp.float32)

    # (padding, output_padding) = (0, 0): Deconv2d default (crop to 2Hx2W);
    #                             (1, 1): the config used by FeatureNet/DeConv2dFuse.
    for padding, output_padding in ((0, 0), (1, 1)):
        out = deconv2d_forward(x, weight, gamma, beta, stride=2,
                               padding=padding, output_padding=output_padding,
                               relu=True)
        out = jax.block_until_ready(out)
        ref = _reference_forward(x, weight, gamma, beta, stride=2,
                                 padding=padding, output_padding=output_padding,
                                 relu=True)
        np.testing.assert_allclose(np.asarray(out), np.asarray(ref),
                                   rtol=2e-3, atol=2e-3)
        assert out.shape == (N, COUT, 2 * H, 2 * W), out.shape

    # bf16 MXU operands with f32 accumulation (the v6e/v7x fast path).
    out_bf16 = deconv2d_forward(x, weight, gamma, beta, stride=2, padding=1,
                                output_padding=1, relu=True,
                                mxu_dtype=jnp.bfloat16)
    out_bf16 = jax.block_until_ready(out_bf16)
    ref = _reference_forward(x, weight, gamma, beta, stride=2, padding=1,
                             output_padding=1, relu=True)
    np.testing.assert_allclose(np.asarray(out_bf16), np.asarray(ref),
                               rtol=5e-2, atol=5e-2)

    print("KERNEL_OK")
</pallas_src>

<mosaic_0001>
module attributes {stable_mosaic.version = 11 : i64} {
  func.func @_deconv_bn_relu_kernel(%arg0: i32, %arg1: memref<2x8x256xf32, #tpu.memory_space<vmem>>, %arg2: memref<32x32xf32, #tpu.memory_space<vmem>>, %arg3: memref<4x512xf32, #tpu.memory_space<vmem>>, %arg4: memref<8x1xf32, #tpu.memory_space<vmem>>, %arg5: memref<8x1xf32, #tpu.memory_space<vmem>>, %arg6: memref<32x512xf32, #tpu.memory_space<vmem>>) attributes {dimension_semantics = [#tpu.dimension_semantics<arbitrary>], iteration_bounds = array<i64: 1>, scalar_prefetch = 0 : i64, scratch_operands = 0 : i64, tpu.core_type = #tpu.core_type<tc>, window_params = [{pipeline_mode = #tpu.pipeline_mode<synchronous>, transform_indices = @transform_0, window_bounds = array<i64: 2, 8, 256>}, {pipeline_mode = #tpu.pipeline_mode<synchronous>, transform_indices = @transform_1, window_bounds = array<i64: 32, 32>}, {pipeline_mode = #tpu.pipeline_mode<synchronous>, transform_indices = @transform_2, window_bounds = array<i64: 4, 512>}, {pipeline_mode = #tpu.pipeline_mode<synchronous>, transform_indices = @transform_3, window_bounds = array<i64: 8, 1>}, {pipeline_mode = #tpu.pipeline_mode<synchronous>, transform_indices = @transform_4, window_bounds = array<i64: 8, 1>}, {pipeline_mode = #tpu.pipeline_mode<synchronous>, transform_indices = @transform_5, window_bounds = array<i64: 32, 512>}]} {
    %c0 = arith.constant 0 : index
    %c0_0 = arith.constant 0 : index
    %c0_1 = arith.constant 0 : index
    %0 = vector.load %arg1[%c0, %c0_0, %c0_1] : memref<2x8x256xf32, #tpu.memory_space<vmem>>, vector<1x8x256xf32>
    %1 = vector.shape_cast %0 : vector<1x8x256xf32> to vector<8x256xf32>
    %c1 = arith.constant 1 : index
    %c0_2 = arith.constant 0 : index
    %c0_3 = arith.constant 0 : index
    %2 = vector.load %arg1[%c1, %c0_2, %c0_3] : memref<2x8x256xf32, #tpu.memory_space<vmem>>, vector<1x8x256xf32>
    %3 = vector.shape_cast %2 : vector<1x8x256xf32> to vector<8x256xf32>
    %4 = tpu.concatenate %1, %3 in 1 : vector<8x256xf32>, vector<8x256xf32> -> vector<8x512xf32>
    %c17_i32 = arith.constant 17 : i32
    %5 = tpu.dynamic_rotate %4 by %c17_i32 dim 1 : vector<8x512xf32>, i32 -> vector<8x512xf32>
    %c0_4 = arith.constant 0 : index
    %c0_5 = arith.constant 0 : index
    %6 = vector.load %arg3[%c0_4, %c0_5] : memref<4x512xf32, #tpu.memory_space<vmem>>, vector<1x512xf32>
    %7 = vector.broadcast %6 : vector<1x512xf32> to vector<8x512xf32>
    %8 = arith.mulf %5, %7 : vector<8x512xf32>
    %c16_i32 = arith.constant 16 : i32
    %9 = tpu.dynamic_rotate %4 by %c16_i32 dim 1 : vector<8x512xf32>, i32 -> vector<8x512xf32>
    %c1_6 = arith.constant 1 : index
    %c0_7 = arith.constant 0 : index
    %10 = vector.load %arg3[%c1_6, %c0_7] : memref<4x512xf32, #tpu.memory_space<vmem>>, vector<1x512xf32>
    %11 = vector.broadcast %10 : vector<1x512xf32> to vector<8x512xf32>
    %12 = arith.mulf %9, %11 : vector<8x512xf32>
    %c1_i32 = arith.constant 1 : i32
    %13 = tpu.dynamic_rotate %4 by %c1_i32 dim 1 : vector<8x512xf32>, i32 -> vector<8x512xf32>
    %c2 = arith.constant 2 : index
    %c0_8 = arith.constant 0 : index
    %14 = vector.load %arg3[%c2, %c0_8] : memref<4x512xf32, #tpu.memory_space<vmem>>, vector<1x512xf32>
    %15 = vector.broadcast %14 : vector<1x512xf32> to vector<8x512xf32>
    %16 = arith.mulf %13, %15 : vector<8x512xf32>
    %c3 = arith.constant 3 : index
    %c0_9 = arith.constant 0 : index
    %17 = vector.load %arg3[%c3, %c0_9] : memref<4x512xf32, #tpu.memory_space<vmem>>, vector<1x512xf32>
    %18 = vector.broadcast %17 : vector<1x512xf32> to vector<8x512xf32>
    %19 = arith.mulf %4, %18 : vector<8x512xf32>
    %20 = tpu.concatenate %8, %12, %16, %19 in 0 : vector<8x512xf32>, vector<8x512xf32>, vector<8x512xf32>, vector<8x512xf32> -> vector<32x512xf32>
    %c0_10 = arith.constant 0 : index
    %c0_11 = arith.constant 0 : index
    %21 = vector.load %arg2[%c0_10, %c0_11] : memref<32x32xf32, #tpu.memory_space<vmem>>, vector<32x32xf32>
    %cst = arith.constant dense<0.000000e+00> : vector<32x512xf32>
    %22 = tpu.matmul %21, %20, %cst {dimension_numbers = #tpu.dot_dimension_numbers<[1], [0], [0], [1], [0, 0, 1, 1], [], []>} : vector<32x32xf32>, vector<32x512xf32>, vector<32x512xf32> -> vector<32x512xf32>
    %cst_12 = arith.constant dense<0.000000e+00> : vector<32xf32>
    %23 = vector.multi_reduction <add>, %22, %cst_12 [1] : vector<32x512xf32> to vector<32xf32>
    %24 = vector.shape_cast %23 : vector<32xf32> to vector<32x1xf32>
    %25 = vector.extract_strided_slice %24 {offsets = [0, 0], sizes = [8, 1], strides = [1, 1]} : vector<32x1xf32> to vector<8x1xf32>
    %26 = vector.extract_strided_slice %24 {offsets = [8, 0], sizes = [8, 1], strides = [1, 1]} : vector<32x1xf32> to vector<8x1xf32>
    %27 = arith.addf %25, %26 : vector<8x1xf32>
    %28 = vector.extract_strided_slice %24 {offsets = [16, 0], sizes = [8, 1], strides = [1, 1]} : vector<32x1xf32> to vector<8x1xf32>
    %29 = arith.addf %27, %28 : vector<8x1xf32>
    %30 = vector.extract_strided_slice %24 {offsets = [24, 0], sizes = [8, 1], strides = [1, 1]} : vector<32x1xf32> to vector<8x1xf32>
    %31 = arith.addf %29, %30 : vector<8x1xf32>
    %cst_13 = arith.constant 4.8828125E-4 : f32
    %32 = vector.broadcast %cst_13 : f32 to vector<8x1xf32>
    %33 = arith.mulf %31, %32 : vector<8x1xf32>
    %34 = tpu.concatenate %33, %33, %33, %33 in 0 : vector<8x1xf32>, vector<8x1xf32>, vector<8x1xf32>, vector<8x1xf32> -> vector<32x1xf32>
    %35 = vector.broadcast %34 : vector<32x1xf32> to vector<32x512xf32>
    %36 = arith.subf %22, %35 : vector<32x512xf32>
    %37 = arith.mulf %36, %36 : vector<32x512xf32>
    %cst_14 = arith.constant dense<0.000000e+00> : vector<32xf32>
    %38 = vector.multi_reduction <add>, %37, %cst_14 [1] : vector<32x512xf32> to vector<32xf32>
    %39 = vector.shape_cast %38 : vector<32xf32> to vector<32x1xf32>
    %40 = vector.extract_strided_slice %39 {offsets = [0, 0], sizes = [8, 1], strides = [1, 1]} : vector<32x1xf32> to vector<8x1xf32>
    %41 = vector.extract_strided_slice %39 {offsets = [8, 0], sizes = [8, 1], strides = [1, 1]} : vector<32x1xf32> to vector<8x1xf32>
    %42 = arith.addf %40, %41 : vector<8x1xf32>
    %43 = vector.extract_strided_slice %39 {offsets = [16, 0], sizes = [8, 1], strides = [1, 1]} : vector<32x1xf32> to vector<8x1xf32>
    %44 = arith.addf %42, %43 : vector<8x1xf32>
    %45 = vector.extract_strided_slice %39 {offsets = [24, 0], sizes = [8, 1], strides = [1, 1]} : vector<32x1xf32> to vector<8x1xf32>
    %46 = arith.addf %44, %45 : vector<8x1xf32>
    %cst_15 = arith.constant 4.8828125E-4 : f32
    %47 = vector.broadcast %cst_15 : f32 to vector<8x1xf32>
    %48 = arith.mulf %46, %47 : vector<8x1xf32>
    %cst_16 = arith.constant 0.000000e+00 : f32
    %49 = vector.broadcast %cst_16 : f32 to vector<8x1xf32>
    %50 = arith.maximumf %48, %49 : vector<8x1xf32>
    %c0_17 = arith.constant 0 : index
    %c0_18 = arith.constant 0 : index
    %51 = vector.load %arg4[%c0_17, %c0_18] : memref<8x1xf32, #tpu.memory_space<vmem>>, vector<8x1xf32>
    %cst_19 = arith.constant 9.99999974E-6 : f32
    %52 = vector.broadcast %cst_19 : f32 to vector<8x1xf32>
    %53 = arith.addf %50, %52 : vector<8x1xf32>
    %54 = math.rsqrt %53 : vector<8x1xf32>
    %55 = arith.mulf %51, %54 : vector<8x1xf32>
    %c0_20 = arith.constant 0 : index
    %c0_21 = arith.constant 0 : index
    %56 = vector.load %arg5[%c0_20, %c0_21] : memref<8x1xf32, #tpu.memory_space<vmem>>, vector<8x1xf32>
    %57 = arith.mulf %33, %55 : vector<8x1xf32>
    %58 = arith.subf %56, %57 : vector<8x1xf32>
    %59 = tpu.concatenate %55, %55, %55, %55 in 0 : vector<8x1xf32>, vector<8x1xf32>, vector<8x1xf32>, vector<8x1xf32> -> vector<32x1xf32>
    %60 = tpu.concatenate %58, %58, %58, %58 in 0 : vector<8x1xf32>, vector<8x1xf32>, vector<8x1xf32>, vector<8x1xf32> -> vector<32x1xf32>
    %61 = vector.broadcast %59 : vector<32x1xf32> to vector<32x512xf32>
    %62 = arith.mulf %22, %61 : vector<32x512xf32>
    %63 = vector.broadcast %60 : vector<32x1xf32> to vector<32x512xf32>
    %64 = arith.addf %62, %63 : vector<32x512xf32>
    %cst_22 = arith.constant 0.000000e+00 : f32
    %65 = vector.broadcast %cst_22 : f32 to vector<32x512xf32>
    %66 = arith.maximumf %64, %65 : vector<32x512xf32>
    %c0_23 = arith.constant 0 : index
    %c0_24 = arith.constant 0 : index
    %67 = vector.load %arg6[%c0_23, %c0_24] : memref<32x512xf32, #tpu.memory_space<vmem>>, vector<32x512xf32>
    tpu.vector_store %arg6[%c0_23, %c0_24], %66 {strides = array<i32>} : memref<32x512xf32, #tpu.memory_space<vmem>>, vector<32x512xf32>,
    return
  }
  func.func @transform_0(%arg0: i32) -> (i32, i32, i32) {
    %c0_i32 = arith.constant 0 : i32
    %c0_i32_0 = arith.constant 0 : i32
    %c0_i32_1 = arith.constant 0 : i32
    %c0_i32_2 = arith.constant 0 : i32
    return %c0_i32, %c0_i32_0, %c0_i32_1 : i32, i32, i32
  }
  func.func @transform_1(%arg0: i32) -> (i32, i32) {
    %c0_i32 = arith.constant 0 : i32
    %c0_i32_0 = arith.constant 0 : i32
    %c0_i32_1 = arith.constant 0 : i32
    return %c0_i32, %c0_i32_0 : i32, i32
  }
  func.func @transform_2(%arg0: i32) -> (i32, i32) {
    %c0_i32 = arith.constant 0 : i32
    %c0_i32_0 = arith.constant 0 : i32
    %c0_i32_1 = arith.constant 0 : i32
    return %c0_i32, %c0_i32_0 : i32, i32
  }
  func.func @transform_3(%arg0: i32) -> (i32, i32) {
    %c0_i32 = arith.constant 0 : i32
    %c0_i32_0 = arith.constant 0 : i32
    %c0_i32_1 = arith.constant 0 : i32
    return %c0_i32, %c0_i32_0 : i32, i32
  }
  func.func @transform_4(%arg0: i32) -> (i32, i32) {
    %c0_i32 = arith.constant 0 : i32
    %c0_i32_0 = arith.constant 0 : i32
    %c0_i32_1 = arith.constant 0 : i32
    return %c0_i32, %c0_i32_0 : i32, i32
  }
  func.func @transform_5(%arg0: i32) -> (i32, i32) {
    %c0_i32 = arith.constant 0 : i32
    %c0_i32_0 = arith.constant 0 : i32
    %c0_i32_1 = arith.constant 0 : i32
    return %c0_i32, %c0_i32_0 : i32, i32
  }
}

</mosaic_0001>

<bundles_post_ra>
// kernel: tpu_custom_call.1
= control target key start
LH: loop header
LB: loop body
LE: loop exit
PB: predicated region body
PF: predicated region fallthrough
CT: control target
= control target key end

     0   :  { %10 = vsyncpa [#allocation3], 0  ;;  %s782_s0 = inlined_call_operand.hbm [shape: f32[2,8,256], index: 0, kind: input, shape index: {}]   ;;  %s783_s1 = inlined_call_operand.hbm [shape: f32[32,32], index: 1, kind: input, shape index: {}]   ;;  %s784_s2 = inlined_call_operand.vmem [shape: f32[4,512], index: 2, kind: input, shape index: {}]   ;;  %s785_s3 = inlined_call_operand.vmem [shape: f32[8,1], index: 3, kind: input, shape index: {}]   ;;  %s786_s4 = inlined_call_operand.vmem [shape: f32[8,1], index: 4, kind: input, shape index: {}]   ;;  %s787_s5 = inlined_call_operand.hbm [shape: f32[32,512], index: 5, kind: output, shape index: {}]  }
   0x1   :  { %11 = vsyncpa [#allocation6], 0 }
   0x2   :  { %12 = vsyncpa [#allocation4], 0  ;;  %s17_s20 = sshll.u32 %s782_s0, 4  ;;  %s601_s21 = smov [#allocation2]   ;;  %s18_s20 = int_to_ptr.hbm [resolvable:$true] %s17_s20 }
   0x3   :  { %s19_s22 = sshll.u32 %s601_s21, 4  ;;  %s30_s25 = sshll.u32 %s783_s1, 4  ;;  %s20_s22 = int_to_ptr.vmem [resolvable:$true] %s19_s22  ;;  %s31_s25 = int_to_ptr.hbm [resolvable:$true] %s30_s25 }
   0x4   :  { %s602_s26 = smov 256   ;;  %s603_s27 = smov 16  }
   0x5   :  { %25 = dma.hbm_to_vmem [thread:$0]  %s18_s20, 512, %s20_s22, [#allocation3], %s602_s26, %s602_s26, %s603_s27  }
   0x6   :  { %s604_s28 = smov [#allocation5]   ;;  %s605_s30 = smov 128  }
   0x7   :  { %s32_s29 = sshll.u32 %s604_s28, 4  ;;  %s606_s6 = smov 8   ;;  %s33_s29 = int_to_ptr.vmem [resolvable:$true] %s32_s29 }
   0x8   :  { %38 = dma.hbm_to_vmem [thread:$0]  %s31_s25, 512, %s33_s29, [#allocation6], %s605_s30, %s605_s30, %s606_s6  }
   0x9   :  { %595 = dma.done.wait [#allocation3], 512  }
   0xa   :  { %596 = vsyncadd [#allocation3], 4294966784 }
   0xb   :  { %597 = dma.done.wait [#allocation6], 512  }
   0xc   :  { %598 = vsyncadd [#allocation6], 4294966784  ;;  %v54_v0 = vld [vmem:[#allocation2 + $0x8] sm:$0xff]  ;;  %v57_v1 = vld [vmem:[#allocation2 + $0x18] sm:$0xff]  ;;  %s607_s0 = smov 1   ;;  %s608_s1 = smov 17   ;;  %v66_v15 = vlaneseq }
   0xd   :  { %89 = vrot.lane.b32.xlu1 %v54_v0, %s603_s27  ;;  %117 = vrot.lane.b32.xlu0 %v54_v0, %s607_s0  ;;  %v56_v2 = vld [vmem:[#allocation2 + $0x10] sm:$0xff]  ;;  %v53_v3 = vld [vmem:[#allocation2] sm:$0xff]  ;;  %vm162_vm3 = vcmask 261120   ;;  %s473_s20 = sshll.u32 %s787_s5, 4  ;;  %s611_s21 = smov 512   ;;  %s474_s20 = int_to_ptr.hbm [resolvable:$true] %s473_s20 }
   0xe   :  { %121 = vrot.lane.b32.xlu2 %v57_v1, %s607_s0  ;;  %v489_v4 = vld [vmem:[%s784_s2 + $0x3] ss:$4 sm:$0xf]  ;;  %v67_v16 = vand.u32 127, %v66_v15  ;;  %s612_s22 = smov 32  }
   0xf   :  { %v147_v5 = vperm.slane %v489_v4, 1  ;;  %v146_v7 = vperm.slane %v489_v4, 0  ;;  %v148_v9 = vperm.slane %v489_v4, 2  ;;  %v149_v10 = vperm.slane %v489_v4, 3  ;;  %v158_v48 = vld [vmem:[#allocation5] sm:$0xff]  ;;  %v160_v4 = vld [vmem:[#allocation5 + $0x10] sm:$0xff] }
  0x10   :  { %v488_v17 = vld [vmem:[%s784_s2 + $0x2] ss:$4 sm:$0xf]  ;;  %vm123_vm0 = vcmp.lt.s32.totalorder %v67_v16, 1  ;;  %vm95_vm1 = vcmp.lt.s32.totalorder %v67_v16, 16  ;;  %vm68_vm2 = vcmp.lt.s32.totalorder %v67_v16, 17 }
  0x11   :  { %v155_v6 = vmul.f32 %v147_v5, %v54_v0  ;;  %v154_v8 = vmul.f32 %v146_v7, %v53_v3  ;;  %v156_v11 = vmul.f32 %v148_v9, %v56_v2  ;;  %v157_v12 = vmul.f32 %v149_v10, %v57_v1  ;;  %v487_v27 = vld [vmem:[%s784_s2 + $0x1] ss:$4 sm:$0xf]  ;;  %v73_v39 = vld [vmem:[%s784_s2] ss:$4 sm:$0xf] }
  0x12   :  { %v131_v18 = vperm.slane %v488_v17, 0  ;;  %v132_v22 = vperm.slane %v488_v17, 1  ;;  %v133_v28 = vperm.slane %v488_v17, 2  ;;  %v134_v29 = vperm.slane %v488_v17, 3  ;;  %v161_v5 = vld [vmem:[#allocation5 + $0x18] sm:$0xff] }
  0x13   :  { %216 = vmatpush.msra.mxu1 %v155_v6  ;;  %187 = vmatpush.msra.mxu0 %v154_v8  ;;  %v105_v32 = vperm.slane %v487_v27, 2  ;;  %v77_v40 = vperm.slane %v73_v39, 2  ;;  %v106_v41 = vperm.slane %v487_v27, 3  ;;  %v103_v49 = vperm.slane %v487_v27, 0 }
  0x14   :  { %245 = vmatpush.msra.mxu2 %v156_v11  ;;  %274 = vmatpush.msra.mxu3 %v157_v12  ;;  %v104_v50 = vperm.slane %v487_v27, 1  ;;  %v78_v51 = vperm.slane %v73_v39, 3  ;;  %v75_v55 = vperm.slane %v73_v39, 0  ;;  %v76_v56 = vperm.slane %v73_v39, 1 }
  0x15   :  { %91 = vrot.lane.b32.xlu1 %v56_v2, %s603_s27  ;;  %119 = vrot.lane.b32.xlu0 %v56_v2, %s607_s0 }
  0x16   :  { %60 = vrot.lane.b32.xlu2 %v54_v0, %s608_s1 }
  0x1d   :  { %93 = vrot.lane.b32.xlu1 %v57_v1, %s603_s27  ;;  %62 = vrot.lane.b32.xlu0 %v56_v2, %s608_s1 }
  0x1e   :  { %115 = vrot.lane.b32.xlu2 %v53_v3, %s607_s0 }
  0x25   :  { %64 = vrot.lane.b32.xlu0 %v57_v1, %s608_s1  ;;  %87 = vrot.lane.b32.xlu1 %v53_v3, %s603_s27  ;;  %v159_v1 = vld [vmem:[#allocation5 + $0x8] sm:$0xff] }
  0x26   :  { %58 = vrot.lane.b32.xlu2 %v53_v3, %s608_s1 }
  0x68   :  { %v122_v13 = vpop.permute.xlu2 %121 }
  0x70   :  { %v61_v14 = vpop.permute.xlu2 %60 }
  0x78   :  { %v116_v19 = vpop.permute.xlu2 %115 }
  0x79   :  { %v127_v20 = vsel %vm123_vm0, %v122_v13, %v116_v19 }
  0x7a   :  { %v139_v21 = vmul.f32 %v131_v18, %v127_v20 }
  0x7c   :  { %188 = vmatpush.msra.mxu0 %v139_v21 }
  0x7f   :  { %v90_v23 = vpop.permute.xlu1 %89  ;;  %v118_v24 = vpop.permute.xlu0 %117 }
  0x80   :  { %v126_v25 = vsel %vm123_vm0, %v116_v19, %v118_v24  ;;  %v59_v52 = vpop.permute.xlu2 %58 }
  0x81   :  { %v140_v26 = vmul.f32 %v132_v22, %v126_v25  ;;  %v71_v61 = vsel %vm68_vm2, %v59_v52, %v61_v14 }
  0x82   :  { %v84_v3 = vmul.f32 %v76_v56, %v71_v61 }
  0x83   :  { %217 = vmatpush.msra.mxu1 %v140_v26 }
  0x87   :  { %v92_v30 = vpop.permute.xlu1 %91  ;;  %v120_v31 = vpop.permute.xlu0 %119 }
  0x88   :  { %v97_v33 = vsel %vm95_vm1, %v90_v23, %v92_v30  ;;  %v124_v34 = vsel %vm123_vm0, %v120_v31, %v122_v13  ;;  %v125_v35 = vsel %vm123_vm0, %v118_v24, %v120_v31 }
  0x89   :  { %v141_v36 = vmul.f32 %v133_v28, %v125_v35  ;;  %v142_v37 = vmul.f32 %v134_v29, %v124_v34  ;;  %v113_v38 = vmul.f32 %v105_v32, %v97_v33  ;;  %v609_v34 = vmov 0  }
  0x8a   :  { %518 = vset.pattern.permute.xlu0 %v609_v34  ;;  %519 = vset.pattern.permute.xlu1 %v609_v34 }
  0x8b   :  { %246 = vmatpush.msra.mxu2 %v141_v36  ;;  %275 = vmatpush.msra.mxu3 %v142_v37 }
  0x8c   :  { %520 = vset.pattern.permute.xlu2 %v609_v34 }
  0x8d   :  { %247 = vmatpush.msra.mxu2 %v113_v38 }
  0x8f   :  { %v94_v42 = vpop.permute.xlu1 %93  ;;  %v63_v43 = vpop.permute.xlu0 %62 }
  0x90   :  { %v96_v44 = vsel %vm95_vm1, %v92_v30, %v94_v42  ;;  %v70_v45 = vsel %vm68_vm2, %v61_v14, %v63_v43 }
  0x91   :  { %v85_v46 = vmul.f32 %v77_v40, %v70_v45  ;;  %v114_v47 = vmul.f32 %v106_v41, %v96_v44 }
  0x93   :  { %248 = vmatpush.msra.mxu2 %v85_v46  ;;  %276 = vmatpush.msra.mxu3 %v114_v47 }
  0x94   :  { %498 = vmatmul.msk.f32.vlgmr.msra.gmra.mxu2 %vm162_vm3, %v158_v48 }
  0x97   :  { %v65_v53 = vpop.permute.xlu0 %64  ;;  %v88_v54 = vpop.permute.xlu1 %87 }
  0x98   :  { %v69_v57 = vsel %vm68_vm2, %v63_v43, %v65_v53  ;;  %v72_v58 = vsel %vm68_vm2, %v65_v53, %v59_v52  ;;  %v98_v59 = vsel %vm95_vm1, %v88_v54, %v90_v23  ;;  %v99_v60 = vsel %vm95_vm1, %v94_v42, %v88_v54 }
  0x99   :  { %v111_v62 = vmul.f32 %v103_v49, %v99_v60  ;;  %v112_v63 = vmul.f32 %v104_v50, %v98_v59  ;;  %v86_v0 = vmul.f32 %v78_v51, %v69_v57  ;;  %v83_v2 = vmul.f32 %v75_v55, %v72_v58 }
  0x9b   :  { %189 = vmatpush.msra.mxu0 %v111_v62  ;;  %218 = vmatpush.msra.mxu1 %v112_v63 }
  0x9c   :  { %277 = vmatpush.msra.mxu3 %v86_v0  ;;  %499 = vmatmul.msk.f32.gmra.mxu2 %vm162_vm3, %v159_v1 }
  0x9d   :  { %502 = vmatmul.msk.f32.vlgmr.msra.gmra.mxu3 %vm162_vm3, %v158_v48  ;;  %190 = vmatpush.msra.mxu0 %v83_v2 }
  0x9e   :  { %219 = vmatpush.msra.mxu1 %v84_v3  ;;  %490 = vmatmul.msk.f32.vlgmr.msra.gmra.mxu0 %vm162_vm3, %v158_v48 }
  0x9f   :  { %494 = vmatmul.msk.f32.vlgmr.msra.gmra.mxu1 %vm162_vm3, %v158_v48 }
  0xa4   :  { %500 = vmatmul.msk.f32.gmra.mxu2 %vm162_vm3, %v160_v4 }
  0xa5   :  { %503 = vmatmul.msk.f32.gmra.mxu3 %vm162_vm3, %v159_v1 }
  0xa6   :  { %491 = vmatmul.msk.f32.gmra.mxu0 %vm162_vm3, %v159_v1 }
  0xa7   :  { %495 = vmatmul.msk.f32.gmra.mxu1 %vm162_vm3, %v159_v1 }
  0xac   :  { %501 = vmatmul.msk.f32.gmra.mxu2 %vm162_vm3, %v161_v5 }
  0xad   :  { %504 = vmatmul.msk.f32.gmra.mxu3 %vm162_vm3, %v160_v4 }
  0xae   :  { %492 = vmatmul.msk.f32.gmra.mxu0 %vm162_vm3, %v160_v4 }
  0xaf   :  { %496 = vmatmul.msk.f32.gmra.mxu1 %vm162_vm3, %v160_v4 }
  0xb5   :  { %505 = vmatmul.msk.f32.gmra.mxu3 %vm162_vm3, %v161_v5 }
  0xb6   :  { %493 = vmatmul.msk.f32.gmra.mxu0 %vm162_vm3, %v161_v5 }
  0xb7   :  { %497 = vmatmul.msk.f32.gmra.mxu1 %vm162_vm3, %v161_v5 }
 0x117   :  { %v689_v6 = vpop.f32.mrf.mxu2 }
 0x11b   :  { %v691_v7 = vpop.f32.mrf.mxu0 }
 0x11c   :  { %v693_v8 = vpop.f32.mrf.mxu1 }
 0x11d   :  { %v291_v9 = vadd.f32 %v693_v8, %v691_v7 }
 0x11f   :  { %v292_v10 = vadd.f32 %v291_v9, %v689_v6  ;;  %v700_v12 = vpop.f32.mrf.mxu2 }
 0x120   :  { %v698_v11 = vpop.f32.mrf.mxu3 }
 0x121   :  { %v293_v13 = vadd.f32 %v292_v10, %v698_v11 }
 0x123   :  { %294 = vadd.xlane.f32.xlu0 %v293_v13  ;;  %v703_v14 = vpop.f32.mrf.mxu0 }
 0x124   :  { %v705_v15 = vpop.f32.mrf.mxu1 }
 0x125   :  { %v296_v16 = vadd.f32 %v705_v15, %v703_v14 }
 0x127   :  { %v297_v17 = vadd.f32 %v296_v16, %v700_v12  ;;  %v713_v20 = vpop.f32.mrf.mxu2 }
 0x128   :  { %v710_v18 = vpop.f32.mrf.mxu3 }
 0x129   :  { %v298_v19 = vadd.f32 %v297_v17, %v710_v18 }
 0x12b   :  { %299 = vadd.xlane.f32.xlu1 %v298_v19  ;;  %v715_v21 = vpop.f32.mrf.mxu0 }
 0x12c   :  { %v717_v22 = vpop.f32.mrf.mxu1 }
 0x12d   :  { %v301_v23 = vadd.f32 %v717_v22, %v715_v21 }
 0x12f   :  { %v302_v24 = vadd.f32 %v301_v23, %v713_v20  ;;  %v729_v29 = vpop.f32.mrf.mxu2 }
 0x130   :  { %v722_v25 = vpop.f32.mrf.mxu3 }
 0x131   :  { %v303_v26 = vadd.f32 %v302_v24, %v722_v25 }
 0x133   :  { %304 = vadd.xlane.f32.xlu2 %v303_v26  ;;  %v725_v27 = vpop.f32.mrf.mxu0 }
 0x134   :  { %v727_v28 = vpop.f32.mrf.mxu1 }
 0x135   :  { %v306_v30 = vadd.f32 %v727_v28, %v725_v27 }
 0x137   :  { %v307_v31 = vadd.f32 %v306_v30, %v729_v29 }
 0x138   :  { %v734_v32 = vpop.f32.mrf.mxu3 }
 0x139   :  { %v308_v33 = vadd.f32 %v307_v31, %v734_v32 }
 0x13b   :  { %309 = vadd.xlane.f32.xlu2 %v308_v33 }
 0x196   :  { %v295_v37 = vpop.xlane.xlu0 %294 }
 0x19e   :  { %v300_v36 = vpop.xlane.xlu1 %299 }
 0x19f   :  { %v311_v38 = vadd.f32 %v300_v36, %v295_v37 }
 0x1a6   :  { %v305_v35 = vpop.xlane.xlu2 %304 }
 0x1a7   :  { %v312_v39 = vadd.f32 %v311_v38, %v305_v35 }
 0x1ae   :  { %v310_v40 = vpop.xlane.xlu2 %309 }
 0x1af   :  { %v313_v41 = vadd.f32 %v312_v39, %v310_v40 }
 0x1b1   :  { %v737_v42 = vmul.f32 0.00048828125, %v313_v41 }
 0x1b3   :  { %317 = vperm.xlu0 %518, %v737_v42  }
 0x225   :  { %v318_v43 = vpop.permute.xlu0 %317 }
 0x226   :  { %v324_v44 = vsub.f32 %v703_v14, %v318_v43  ;;  %v325_v45 = vsub.f32 %v705_v15, %v318_v43  ;;  %v326_v46 = vsub.f32 %v700_v12, %v318_v43  ;;  %v327_v47 = vsub.f32 %v710_v18, %v318_v43 }
 0x227   :  { %v320_v48 = vsub.f32 %v691_v7, %v318_v43  ;;  %v321_v49 = vsub.f32 %v693_v8, %v318_v43  ;;  %v322_v50 = vsub.f32 %v689_v6, %v318_v43  ;;  %v323_v54 = vsub.f32 %v698_v11, %v318_v43 }
 0x228   :  { %v340_v51 = vmul.f32 %v324_v44, %v324_v44  ;;  %v341_v52 = vmul.f32 %v325_v45, %v325_v45  ;;  %v342_v53 = vmul.f32 %v326_v46, %v326_v46  ;;  %v343_v57 = vmul.f32 %v327_v47, %v327_v47 }
 0x229   :  { %v336_v55 = vmul.f32 %v320_v48, %v320_v48  ;;  %v337_v56 = vmul.f32 %v321_v49, %v321_v49  ;;  %v332_v59 = vsub.f32 %v725_v27, %v318_v43  ;;  %v333_v60 = vsub.f32 %v727_v28, %v318_v43 }
 0x22a   :  { %v357_v58 = vadd.f32 %v341_v52, %v340_v51  ;;  %v338_v61 = vmul.f32 %v322_v50, %v322_v50  ;;  %v328_v63 = vsub.f32 %v715_v21, %v318_v43  ;;  %v329_v0 = vsub.f32 %v717_v22, %v318_v43 }
 0x22b   :  { %v352_v62 = vadd.f32 %v337_v56, %v336_v55  ;;  %v334_v2 = vsub.f32 %v729_v29, %v318_v43  ;;  %v348_v3 = vmul.f32 %v332_v59, %v332_v59  ;;  %v349_v4 = vmul.f32 %v333_v60, %v333_v60  ;;  %v377_v56 = vld [vmem:[%s785_s3] sm:$0xff]  ;;  %s610_s3 = smov [#allocation7]  }
 0x22c   :  { %v358_v1 = vadd.f32 %v357_v58, %v342_v53  ;;  %v339_v5 = vmul.f32 %v323_v54, %v323_v54  ;;  %v330_v10 = vsub.f32 %v713_v20, %v318_v43  ;;  %v344_v17 = vmul.f32 %v328_v63, %v328_v63  ;;  %v390_v60 = vld [vmem:[%s786_s4] sm:$0xff]  ;;  %s471_s4 = sshll.u32 %s610_s3, 4  ;;  %s472_s4 = int_to_ptr.vmem [resolvable:$true] %s471_s4 }
 0x22d   :  { %v353_v9 = vadd.f32 %v352_v62, %v338_v61  ;;  %v367_v16 = vadd.f32 %v349_v4, %v348_v3  ;;  %v345_v19 = vmul.f32 %v329_v0, %v329_v0  ;;  %v335_v24 = vsub.f32 %v734_v32, %v318_v43 }
 0x22e   :  { %v359_v13 = vadd.f32 %v358_v1, %v343_v57  ;;  %v350_v26 = vmul.f32 %v334_v2, %v334_v2  ;;  %v331_v31 = vsub.f32 %v722_v25, %v318_v43  ;;  %v346_v33 = vmul.f32 %v330_v10, %v330_v10 }
 0x22f   :  { %v354_v23 = vadd.f32 %v353_v9, %v339_v5  ;;  %v362_v30 = vadd.f32 %v345_v19, %v344_v17  ;;  %v351_v36 = vmul.f32 %v335_v24, %v335_v24 }
 0x230   :  { %360 = vadd.xlane.f32.xlu2 %v359_v13  ;;  %v368_v34 = vadd.f32 %v367_v16, %v350_v26  ;;  %v347_v37 = vmul.f32 %v331_v31, %v331_v31 }
 0x231   :  { %355 = vadd.xlane.f32.xlu1 %v354_v23  ;;  %v363_v35 = vadd.f32 %v362_v30, %v346_v33 }
 0x232   :  { %v369_v38 = vadd.f32 %v368_v34, %v351_v36 }
 0x233   :  { %v364_v39 = vadd.f32 %v363_v35, %v347_v37 }
 0x238   :  { %370 = vadd.xlane.f32.xlu2 %v369_v38 }
 0x239   :  { %365 = vadd.xlane.f32.xlu1 %v364_v39 }
 0x2a3   :  { %v361_v40 = vpop.xlane.xlu2 %360 }
 0x2a4   :  { %v356_v41 = vpop.xlane.xlu1 %355 }
 0x2a5   :  { %v372_v44 = vadd.f32 %v361_v40, %v356_v41 }
 0x2ab   :  { %v371_v47 = vpop.xlane.xlu2 %370 }
 0x2ac   :  { %v366_v45 = vpop.xlane.xlu1 %365 }
 0x2ad   :  { %v373_v46 = vadd.f32 %v372_v44, %v366_v45 }
 0x2af   :  { %v374_v48 = vadd.f32 %v373_v46, %v371_v47 }
 0x2b1   :  { %v375_v49 = vmul.f32 0.00048828125, %v374_v48 }
 0x2b3   :  { %v376_v50 = vmax.f32 %v375_v49, 0.0 }
 0x2b5   :  { %v378_v51 = vadd.f32 1e-05, %v376_v50 }
 0x2b7   :  { %521 = vrsqrt.f32 %v378_v51  ;;  %vm385_vm5 = vweird.f32 %v378_v51 }
 0x2bd   :  { %v522_v43 = vpop.eup %521 }
 0x2be   :  { %v380_v52 = vmul.f32 %v522_v43, %v378_v51  ;;  %vm386_vm4 = vweird.f32 %v522_v43 }
 0x2bf   :  { %vm387_vm6 = vmor %vm385_vm5, %vm386_vm4 }
 0x2c0   :  { %v381_v53 = vmul.f32 %v522_v43, %v380_v52 }
 0x2c2   :  { %v382_v54 = vmul.f32 0.5, %v381_v53 }
 0x2c4   :  { %v383_v55 = vsub.f32 1.5, %v382_v54 }
 0x2c6   :  { %v384_v57 = vmul.f32 %v522_v43, %v383_v55 }
 0x2c8   :  { %v388_v58 = vsel %vm387_vm6, %v522_v43, %v384_v57 }
 0x2c9   :  { %v389_v59 = vmul.f32 %v388_v58, %v377_v56 }
 0x2cb   :  { %395 = vperm.xlu1 %519, %v389_v59   ;;  %v391_v61 = vmul.f32 %v389_v59, %v737_v42 }
 0x2cd   :  { %v392_v62 = vsub.f32 %v390_v60, %v391_v61 }
 0x2cf   :  { %416 = vperm.xlu2 %520, %v392_v62  }
 0x329   :  { %v417_v5 = vpop.permute.xlu2 %416 }
 0x33d   :  { %v396_v63 = vpop.permute.xlu1 %395 }
 0x33e   :  { %v398_v0 = vmul.f32 %v396_v63, %v691_v7  ;;  %v399_v1 = vmul.f32 %v396_v63, %v693_v8  ;;  %v400_v2 = vmul.f32 %v396_v63, %v689_v6  ;;  %v401_v3 = vmul.f32 %v396_v63, %v698_v11 }
 0x33f   :  { %v402_v4 = vmul.f32 %v396_v63, %v703_v14  ;;  %v403_v9 = vmul.f32 %v396_v63, %v705_v15  ;;  %v404_v10 = vmul.f32 %v396_v63, %v700_v12  ;;  %v405_v17 = vmul.f32 %v396_v63, %v710_v18 }
 0x340   :  { %v419_v13 = vadd.f32 %v417_v5, %v398_v0  ;;  %v420_v42 = vadd.f32 %v417_v5, %v399_v1  ;;  %v421_v16 = vadd.f32 %v417_v5, %v400_v2  ;;  %v422_v19 = vadd.f32 %v417_v5, %v401_v3 }
 0x341   :  { %v406_v7 = vmul.f32 %v396_v63, %v715_v21  ;;  %v423_v8 = vadd.f32 %v417_v5, %v402_v4  ;;  %v407_v6 = vmul.f32 %v396_v63, %v717_v22  ;;  %v408_v11 = vmul.f32 %v396_v63, %v713_v20 }
 0x342   :  { %v424_v23 = vadd.f32 %v417_v5, %v403_v9  ;;  %v425_v14 = vadd.f32 %v417_v5, %v404_v10  ;;  %v435_v24 = vmax.f32 %v419_v13, 0.0  ;;  %v436_v26 = vmax.f32 %v420_v42, 0.0 }
 0x343   :  { %v437_v15 = vmax.f32 %v421_v16, 0.0  ;;  %v409_v12 = vmul.f32 %v396_v63, %v722_v25  ;;  %v426_v30 = vadd.f32 %v417_v5, %v405_v17  ;;  %v438_v31 = vmax.f32 %v422_v19, 0.0 }
 0x344   :  { %v410_v33 = vmul.f32 %v396_v63, %v725_v27  ;;  %v427_v18 = vadd.f32 %v417_v5, %v406_v7  ;;  %v439_v34 = vmax.f32 %v423_v8, 0.0  ;;  %451 = vst [vmem:[#allocation7] sm:$0xff] %v435_v24  ;;  %v411_v21 = vmul.f32 %v396_v63, %v727_v28 }
 0x345   :  { %v428_v35 = vadd.f32 %v417_v5, %v407_v6  ;;  %v440_v22 = vmax.f32 %v424_v23, 0.0  ;;  %452 = vst [vmem:[#allocation7 + $0x8] sm:$0xff] %v436_v26  ;;  %v412_v20 = vmul.f32 %v396_v63, %v729_v29  ;;  %v429_v36 = vadd.f32 %v417_v5, %v408_v11 }
 0x346   :  { %v441_v37 = vmax.f32 %v425_v14, 0.0  ;;  %453 = vst [vmem:[#allocation7 + $0x10] sm:$0xff] %v437_v15  ;;  %v413_v38 = vmul.f32 %v396_v63, %v734_v32  ;;  %v430_v25 = vadd.f32 %v417_v5, %v409_v12  ;;  %v442_v39 = vmax.f32 %v426_v30, 0.0 }
 0x347   :  { %454 = vst [vmem:[#allocation7 + $0x18] sm:$0xff] %v438_v31  ;;  %v431_v40 = vadd.f32 %v417_v5, %v410_v33  ;;  %v443_v27 = vmax.f32 %v427_v18, 0.0  ;;  %v432_v41 = vadd.f32 %v417_v5, %v411_v21  ;;  %v444_v44 = vmax.f32 %v428_v35, 0.0 }
 0x348   :  { %455 = vst [vmem:[#allocation7 + $0x20] sm:$0xff] %v439_v34  ;;  %v433_v28 = vadd.f32 %v417_v5, %v412_v20  ;;  %v445_v45 = vmax.f32 %v429_v36, 0.0  ;;  %v434_v46 = vadd.f32 %v417_v5, %v413_v38  ;;  %v446_v47 = vmax.f32 %v430_v25, 0.0 }
 0x349   :  { %456 = vst [vmem:[#allocation7 + $0x28] sm:$0xff] %v440_v22  ;;  %v447_v29 = vmax.f32 %v431_v40, 0.0  ;;  %v448_v48 = vmax.f32 %v432_v41, 0.0 }
 0x34a   :  { %457 = vst [vmem:[#allocation7 + $0x30] sm:$0xff] %v441_v37  ;;  %v449_v32 = vmax.f32 %v433_v28, 0.0  ;;  %v450_v49 = vmax.f32 %v434_v46, 0.0 }
 0x34b   :  { %458 = vst [vmem:[#allocation7 + $0x38] sm:$0xff] %v442_v39 }
 0x34c   :  { %459 = vst [vmem:[#allocation7 + $0x40] sm:$0xff] %v443_v27 }
 0x34d   :  { %460 = vst [vmem:[#allocation7 + $0x48] sm:$0xff] %v444_v44 }
 0x34e   :  { %461 = vst [vmem:[#allocation7 + $0x50] sm:$0xff] %v445_v45 }
 0x34f   :  { %462 = vst [vmem:[#allocation7 + $0x58] sm:$0xff] %v446_v47 }
 0x350   :  { %463 = vst [vmem:[#allocation7 + $0x60] sm:$0xff] %v447_v29 }
 0x351   :  { %464 = vst [vmem:[#allocation7 + $0x68] sm:$0xff] %v448_v48 }
 0x352   :  { %465 = vst [vmem:[#allocation7 + $0x70] sm:$0xff] %v449_v32 }
 0x353   :  { %466 = vst [vmem:[#allocation7 + $0x78] sm:$0xff] %v450_v49 }
 0x354   :  { %479 = dma.vmem_to_hbm [thread:$0]  %s472_s4, 2048, %s474_s20, [#allocation4], %s611_s21, %s611_s21, %s612_s22  }
 0x355   :  { %599 = dma.done.wait [#allocation4], 2048  }
 0x356   :  { %600 = vsyncadd [#allocation4], 4294965248 }
 0x357   :  { %484 = vsyncpa [#allocation3], 1 }
 0x358   :  { %485 = vsyncpa [#allocation6], 1 }
 0x359   :  { %486 = vsyncpa [#allocation4], 1 }

</bundles_post_ra>
